<compile_context>
chip_gen: v5e
topology: v5e:2x2
jax: 0.10.0
libtpu: 0.0.40
codegen_flags: <defaults>
</compile_context>

<pallas_src>
import numpy as np

import jax
import jax.numpy as jnp
from jax.experimental import pallas as pl
from jax.experimental.pallas import tpu as pltpu


# ----------------------------- fused kernel -------------------------------

def _make_cascade_kernel(B, H, WC):
    """Kernel for one grid step: x (B, H, WC) -> cascade output (B, H, WC)."""

    def kernel(x_ref, wb_ref, b_ref, o_ref, pad_ref):
        # pad_ref: (B, H+2, WC) f32 scratch, reused by all four convs.
        # Rows 0 and H+1 are the per-image vertical zero padding (written once
        # per grid step); body rows [1:H+1] are overwritten before every conv.
        zrow = jnp.zeros((B, 1, WC), jnp.float32)
        pad_ref[:, 0:1, :] = zrow
        pad_ref[:, H + 1:H + 2, :] = zrow

        def conv_relu(a, i):
            # relu(conv3x3_i(a) + b_i) as a single K = 3*WC MXU matmul.
            pad_ref[:, 1:H + 1, :] = a
            up = pad_ref[:, 0:H, :]        # row h -> a[h-1]  (zero at h = 0)
            dn = pad_ref[:, 2:H + 2, :]    # row h -> a[h+1]  (zero at h = H-1)
            lhs = jnp.concatenate([up, a, dn], axis=-1)          # (B, H, 3*WC)
            lhs = lhs.astype(jnp.bfloat16).reshape(B * H, 3 * WC)
            acc = jnp.dot(lhs, wb_ref[i],                        # bf16 x bf16
                          preferred_element_type=jnp.float32)    # f32 accumulate
            acc = acc + b_ref[i:i + 1, :]
            return jnp.maximum(acc, 0.0).reshape(B, H, WC)

        x = x_ref[...]                 # live f32 value: residual source
        c1 = conv_relu(x, 0)
        y1 = conv_relu(c1, 1) + x      # ResBlock 1: relu(conv2(relu(conv1 x))) + x
        r = jnp.maximum(y1, 0.0)       # cascade's middle ReLU (live value)
        c3 = conv_relu(r, 2)
        y2 = conv_relu(c3, 3) + r      # ResBlock 2
        o_ref[...] = y2 + x            # outer cascade residual

    return kernel


# --------------------------- weight repacking ------------------------------

def _banded_weight(w_oihw, W):
    """Fold a 3x3 conv's horizontal taps + horizontal zero padding into banded
    (W*Cin, W*Cout) matrices acting on the lane-dense (h, w*C) layout, then
    stack the 3 vertical taps along K -> (3*W*Cin, W*Cout), order ky = 0,1,2."""
    wt = jnp.transpose(w_oihw.astype(jnp.float32), (2, 3, 1, 0))  # (ky,kx,Ci,Co)
    shifts = [jnp.asarray(np.eye(W, k=1 - kx), jnp.float32) for kx in range(3)]
    bands = []
    for ky in range(3):
        m = jnp.kron(shifts[0], wt[ky, 0])
        for kx in range(1, 3):
            m = m + jnp.kron(shifts[kx], wt[ky, kx])
        bands.append(m)
    return jnp.concatenate(bands, axis=0)     # (3*W*C, W*C)


# ------------------------------- wrapper -----------------------------------

def cascade_res_block(x_nchw, params, block_n=None):
    """Matches CascadeResBlock.forward for NCHW f32 input."""
    w1, b1, w2, b2, w3, b3, w4, b4 = params
    N, C, H, W = x_nchw.shape
    WC = W * C

    if block_n is None:
        block_n = 1
        for b in range(1, N + 1):            # largest divisor of N with M <= 256
            if N % b == 0 and b * H <= 256:
                block_n = b
    assert N % block_n == 0, (N, block_n)

    # NCHW -> (N, H, W*C): lane-dense activation rows.
    x_flat = jnp.transpose(x_nchw.astype(jnp.float32),
                           (0, 2, 3, 1)).reshape(N, H, WC)

    # Banded, K-merged conv weights in bf16; biases tiled to the lane layout.
    wb = jnp.stack([_banded_weight(w, W)
                    for w in (w1, w2, w3, w4)]).astype(jnp.bfloat16)  # (4,3WC,WC)
    bias = jnp.stack([jnp.tile(b.astype(jnp.float32), W)
                      for b in (b1, b2, b3, b4)])                     # (4, WC)

    flops = 4 * 2 * (N * H) * (3 * WC) * WC
    bytes_accessed = 2 * N * H * WC * 4 + 4 * 3 * WC * WC * 2 + 4 * WC * 4

    kernel = _make_cascade_kernel(block_n, H, WC)
    out_flat = pl.pallas_call(
        kernel,
        out_shape=jax.ShapeDtypeStruct((N, H, WC), jnp.float32),
        grid_spec=pltpu.PrefetchScalarGridSpec(
            num_scalar_prefetch=0,
            grid=(N // block_n,),
            in_specs=[
                pl.BlockSpec((block_n, H, WC), lambda n: (n, 0, 0)),   # x
                pl.BlockSpec((4, 3 * WC, WC), lambda n: (0, 0, 0)),    # weights
                pl.BlockSpec((4, WC), lambda n: (0, 0)),               # biases
            ],
            out_specs=pl.BlockSpec((block_n, H, WC), lambda n: (n, 0, 0)),
            scratch_shapes=[pltpu.VMEM((block_n, H + 2, WC), jnp.float32)],
        ),
        compiler_params=pltpu.CompilerParams(
            dimension_semantics=("parallel",),
            vmem_limit_bytes=32 * 1024 * 1024),
        cost_estimate=pl.CostEstimate(flops=flops, transcendentals=0,
                                      bytes_accessed=bytes_accessed),
    )(x_flat, wb, bias)

    return jnp.transpose(out_flat.reshape(N, H, W, C), (0, 3, 1, 2))


# ---------------- deterministic params + pure-JAX reference ----------------

def init_params(key, C):
    keys = jax.random.split(key, 8)
    params = []
    fan_in = C * 9
    for i in range(4):
        w = jax.random.normal(keys[2 * i], (C, C, 3, 3), jnp.float32)
        w = w * (1.0 / jnp.sqrt(float(fan_in)))
        b = jax.random.normal(keys[2 * i + 1], (C,), jnp.float32) * 0.01
        params += [w, b]
    return params


def _conv_ref(x_nchw, w_oihw, b):
    y = jax.lax.conv_general_dilated(
        x_nchw, w_oihw, window_strides=(1, 1),
        padding=((1, 1), (1, 1)),
        dimension_numbers=("NCHW", "OIHW", "NCHW"))
    return y + b.reshape(1, -1, 1, 1)


def cascade_ref(x_nchw, params):
    w1, b1, w2, b2, w3, b3, w4, b4 = params

    def resblock(x, wa, ba, wb_, bb):
        y = jax.nn.relu(_conv_ref(x, wa, ba))
        y = jax.nn.relu(_conv_ref(y, wb_, bb))
        return y + x

    y1 = resblock(x_nchw, w1, b1, w2, b2)
    r = jax.nn.relu(y1)
    y2 = resblock(r, w3, b3, w4, b4)
    return y2 + x_nchw


if __name__ == "__main__":
    key = jax.random.PRNGKey(0)
    k_x, k_p = jax.random.split(key)

    N, C, H, W = 4, 8, 16, 16   # W*C = 128 -> fully lane-dense rows
    x = jax.random.normal(k_x, (N, C, H, W), jnp.float32)
    params = init_params(k_p, C)

    fn = jax.jit(cascade_res_block, static_argnames=("block_n",))
    out = jax.block_until_ready(fn(x, params, block_n=2))   # grid=(2,), M=32

    ref = jax.block_until_ready(cascade_ref(x, params))
    assert out.shape == (N, C, H, W)
    max_err = float(jnp.max(jnp.abs(out - ref)))
    # bf16 MXU operands (f32 accumulation) -> looser tolerance than pure f32.
    assert jnp.allclose(out, ref, atol=1e-1, rtol=5e-2), (
        f"mismatch vs reference (max abs err {max_err})")

    print("KERNEL_OK")
</pallas_src>

<mosaic_0001>
module attributes {stable_mosaic.version = 11 : i64} {
  func.func @kernel(%arg0: i32, %arg1: memref<2x16x128xf32, #tpu.memory_space<vmem>>, %arg2: memref<4x384x128xbf16, #tpu.memory_space<vmem>>, %arg3: memref<4x128xf32, #tpu.memory_space<vmem>>, %arg4: memref<2x16x128xf32, #tpu.memory_space<vmem>>, %arg5: memref<2x18x128xf32, #tpu.memory_space<vmem>>) attributes {dimension_semantics = [#tpu.dimension_semantics<parallel>], iteration_bounds = array<i64: 2>, scalar_prefetch = 0 : i64, scratch_operands = 1 : i64, tpu.core_type = #tpu.core_type<tc>, window_params = [{transform_indices = @transform_0, window_bounds = array<i64: 2, 16, 128>}, {pipeline_mode = #tpu.pipeline_mode<synchronous>, transform_indices = @transform_1, window_bounds = array<i64: 4, 384, 128>}, {pipeline_mode = #tpu.pipeline_mode<synchronous>, transform_indices = @transform_2, window_bounds = array<i64: 4, 128>}, {transform_indices = @transform_3, window_bounds = array<i64: 2, 16, 128>}]} {
    %cst = arith.constant 0.000000e+00 : f32
    %0 = vector.broadcast %cst : f32 to vector<2x1x128xf32>
    %c0 = arith.constant 0 : index
    %c0_0 = arith.constant 0 : index
    %c0_1 = arith.constant 0 : index
    %1 = vector.load %arg5[%c0, %c0_0, %c0_1] : memref<2x18x128xf32, #tpu.memory_space<vmem>>, vector<2x1x128xf32>
    tpu.vector_store %arg5[%c0, %c0_0, %c0_1], %0 {strides = array<i32>} : memref<2x18x128xf32, #tpu.memory_space<vmem>>, vector<2x1x128xf32>,
    %c0_2 = arith.constant 0 : index
    %c17 = arith.constant 17 : index
    %c0_3 = arith.constant 0 : index
    %2 = vector.load %arg5[%c0_2, %c17, %c0_3] : memref<2x18x128xf32, #tpu.memory_space<vmem>>, vector<2x1x128xf32>
    tpu.vector_store %arg5[%c0_2, %c17, %c0_3], %0 {strides = array<i32>} : memref<2x18x128xf32, #tpu.memory_space<vmem>>, vector<2x1x128xf32>,
    %c0_4 = arith.constant 0 : index
    %c0_5 = arith.constant 0 : index
    %c0_6 = arith.constant 0 : index
    %3 = vector.load %arg1[%c0_4, %c0_5, %c0_6] : memref<2x16x128xf32, #tpu.memory_space<vmem>>, vector<2x16x128xf32>
    %c0_7 = arith.constant 0 : index
    %c1 = arith.constant 1 : index
    %c0_8 = arith.constant 0 : index
    %4 = vector.load %arg5[%c0_7, %c1, %c0_8] : memref<2x18x128xf32, #tpu.memory_space<vmem>>, vector<2x16x128xf32>
    tpu.vector_store %arg5[%c0_7, %c1, %c0_8], %3 {strides = array<i32>} : memref<2x18x128xf32, #tpu.memory_space<vmem>>, vector<2x16x128xf32>,
    %c0_9 = arith.constant 0 : index
    %c0_10 = arith.constant 0 : index
    %c0_11 = arith.constant 0 : index
    %5 = vector.load %arg5[%c0_9, %c0_10, %c0_11] : memref<2x18x128xf32, #tpu.memory_space<vmem>>, vector<2x16x128xf32>
    %c0_12 = arith.constant 0 : index
    %c2 = arith.constant 2 : index
    %c0_13 = arith.constant 0 : index
    %6 = vector.load %arg5[%c0_12, %c2, %c0_13] : memref<2x18x128xf32, #tpu.memory_space<vmem>>, vector<2x16x128xf32>
    %7 = tpu.concatenate %5, %3, %6 in 2 : vector<2x16x128xf32>, vector<2x16x128xf32>, vector<2x16x128xf32> -> vector<2x16x384xf32>
    %8 = arith.truncf %7 : vector<2x16x384xf32> to vector<2x16x384xbf16>
    %9 = vector.shape_cast %8 : vector<2x16x384xbf16> to vector<32x384xbf16>
    %c0_14 = arith.constant 0 : index
    %c0_15 = arith.constant 0 : index
    %c0_16 = arith.constant 0 : index
    %10 = vector.load %arg2[%c0_14, %c0_15, %c0_16] : memref<4x384x128xbf16, #tpu.memory_space<vmem>>, vector<1x384x128xbf16>
    %11 = vector.shape_cast %10 : vector<1x384x128xbf16> to vector<384x128xbf16>
    %cst_17 = arith.constant dense<0.000000e+00> : vector<32x128xf32>
    %12 = tpu.matmul %9, %11, %cst_17 {dimension_numbers = #tpu.dot_dimension_numbers<[1], [0], [0], [1], [0, 0, 1, 1], [], []>} : vector<32x384xbf16>, vector<384x128xbf16>, vector<32x128xf32> -> vector<32x128xf32>
    %c0_18 = arith.constant 0 : index
    %c0_19 = arith.constant 0 : index
    %13 = vector.load %arg3[%c0_18, %c0_19] : memref<4x128xf32, #tpu.memory_space<vmem>>, vector<1x128xf32>
    %14 = vector.broadcast %13 : vector<1x128xf32> to vector<32x128xf32>
    %15 = arith.addf %12, %14 : vector<32x128xf32>
    %cst_20 = arith.constant 0.000000e+00 : f32
    %16 = vector.broadcast %cst_20 : f32 to vector<32x128xf32>
    %17 = arith.maximumf %15, %16 : vector<32x128xf32>
    %18 = vector.shape_cast %17 : vector<32x128xf32> to vector<2x16x128xf32>
    %c0_21 = arith.constant 0 : index
    %c1_22 = arith.constant 1 : index
    %c0_23 = arith.constant 0 : index
    %19 = vector.load %arg5[%c0_21, %c1_22, %c0_23] : memref<2x18x128xf32, #tpu.memory_space<vmem>>, vector<2x16x128xf32>
    tpu.vector_store %arg5[%c0_21, %c1_22, %c0_23], %18 {strides = array<i32>} : memref<2x18x128xf32, #tpu.memory_space<vmem>>, vector<2x16x128xf32>,
    %c0_24 = arith.constant 0 : index
    %c0_25 = arith.constant 0 : index
    %c0_26 = arith.constant 0 : index
    %20 = vector.load %arg5[%c0_24, %c0_25, %c0_26] : memref<2x18x128xf32, #tpu.memory_space<vmem>>, vector<2x16x128xf32>
    %c0_27 = arith.constant 0 : index
    %c2_28 = arith.constant 2 : index
    %c0_29 = arith.constant 0 : index
    %21 = vector.load %arg5[%c0_27, %c2_28, %c0_29] : memref<2x18x128xf32, #tpu.memory_space<vmem>>, vector<2x16x128xf32>
    %22 = tpu.concatenate %20, %18, %21 in 2 : vector<2x16x128xf32>, vector<2x16x128xf32>, vector<2x16x128xf32> -> vector<2x16x384xf32>
    %23 = arith.truncf %22 : vector<2x16x384xf32> to vector<2x16x384xbf16>
    %24 = vector.shape_cast %23 : vector<2x16x384xbf16> to vector<32x384xbf16>
    %c1_30 = arith.constant 1 : index
    %c0_31 = arith.constant 0 : index
    %c0_32 = arith.constant 0 : index
    %25 = vector.load %arg2[%c1_30, %c0_31, %c0_32] : memref<4x384x128xbf16, #tpu.memory_space<vmem>>, vector<1x384x128xbf16>
    %26 = vector.shape_cast %25 : vector<1x384x128xbf16> to vector<384x128xbf16>
    %cst_33 = arith.constant dense<0.000000e+00> : vector<32x128xf32>
    %27 = tpu.matmul %24, %26, %cst_33 {dimension_numbers = #tpu.dot_dimension_numbers<[1], [0], [0], [1], [0, 0, 1, 1], [], []>} : vector<32x384xbf16>, vector<384x128xbf16>, vector<32x128xf32> -> vector<32x128xf32>
    %c1_34 = arith.constant 1 : index
    %c0_35 = arith.constant 0 : index
    %28 = vector.load %arg3[%c1_34, %c0_35] : memref<4x128xf32, #tpu.memory_space<vmem>>, vector<1x128xf32>
    %29 = vector.broadcast %28 : vector<1x128xf32> to vector<32x128xf32>
    %30 = arith.addf %27, %29 : vector<32x128xf32>
    %cst_36 = arith.constant 0.000000e+00 : f32
    %31 = vector.broadcast %cst_36 : f32 to vector<32x128xf32>
    %32 = arith.maximumf %30, %31 : vector<32x128xf32>
    %33 = vector.shape_cast %32 : vector<32x128xf32> to vector<2x16x128xf32>
    %34 = arith.addf %33, %3 : vector<2x16x128xf32>
    %cst_37 = arith.constant 0.000000e+00 : f32
    %35 = vector.broadcast %cst_37 : f32 to vector<2x16x128xf32>
    %36 = arith.maximumf %34, %35 : vector<2x16x128xf32>
    %c0_38 = arith.constant 0 : index
    %c1_39 = arith.constant 1 : index
    %c0_40 = arith.constant 0 : index
    %37 = vector.load %arg5[%c0_38, %c1_39, %c0_40] : memref<2x18x128xf32, #tpu.memory_space<vmem>>, vector<2x16x128xf32>
    tpu.vector_store %arg5[%c0_38, %c1_39, %c0_40], %36 {strides = array<i32>} : memref<2x18x128xf32, #tpu.memory_space<vmem>>, vector<2x16x128xf32>,
    %c0_41 = arith.constant 0 : index
    %c0_42 = arith.constant 0 : index
    %c0_43 = arith.constant 0 : index
    %38 = vector.load %arg5[%c0_41, %c0_42, %c0_43] : memref<2x18x128xf32, #tpu.memory_space<vmem>>, vector<2x16x128xf32>
    %c0_44 = arith.constant 0 : index
    %c2_45 = arith.constant 2 : index
    %c0_46 = arith.constant 0 : index
    %39 = vector.load %arg5[%c0_44, %c2_45, %c0_46] : memref<2x18x128xf32, #tpu.memory_space<vmem>>, vector<2x16x128xf32>
    %40 = tpu.concatenate %38, %36, %39 in 2 : vector<2x16x128xf32>, vector<2x16x128xf32>, vector<2x16x128xf32> -> vector<2x16x384xf32>
    %41 = arith.truncf %40 : vector<2x16x384xf32> to vector<2x16x384xbf16>
    %42 = vector.shape_cast %41 : vector<2x16x384xbf16> to vector<32x384xbf16>
    %c2_47 = arith.constant 2 : index
    %c0_48 = arith.constant 0 : index
    %c0_49 = arith.constant 0 : index
    %43 = vector.load %arg2[%c2_47, %c0_48, %c0_49] : memref<4x384x128xbf16, #tpu.memory_space<vmem>>, vector<1x384x128xbf16>
    %44 = vector.shape_cast %43 : vector<1x384x128xbf16> to vector<384x128xbf16>
    %cst_50 = arith.constant dense<0.000000e+00> : vector<32x128xf32>
    %45 = tpu.matmul %42, %44, %cst_50 {dimension_numbers = #tpu.dot_dimension_numbers<[1], [0], [0], [1], [0, 0, 1, 1], [], []>} : vector<32x384xbf16>, vector<384x128xbf16>, vector<32x128xf32> -> vector<32x128xf32>
    %c2_51 = arith.constant 2 : index
    %c0_52 = arith.constant 0 : index
    %46 = vector.load %arg3[%c2_51, %c0_52] : memref<4x128xf32, #tpu.memory_space<vmem>>, vector<1x128xf32>
    %47 = vector.broadcast %46 : vector<1x128xf32> to vector<32x128xf32>
    %48 = arith.addf %45, %47 : vector<32x128xf32>
    %cst_53 = arith.constant 0.000000e+00 : f32
    %49 = vector.broadcast %cst_53 : f32 to vector<32x128xf32>
    %50 = arith.maximumf %48, %49 : vector<32x128xf32>
    %51 = vector.shape_cast %50 : vector<32x128xf32> to vector<2x16x128xf32>
    %c0_54 = arith.constant 0 : index
    %c1_55 = arith.constant 1 : index
    %c0_56 = arith.constant 0 : index
    %52 = vector.load %arg5[%c0_54, %c1_55, %c0_56] : memref<2x18x128xf32, #tpu.memory_space<vmem>>, vector<2x16x128xf32>
    tpu.vector_store %arg5[%c0_54, %c1_55, %c0_56], %51 {strides = array<i32>} : memref<2x18x128xf32, #tpu.memory_space<vmem>>, vector<2x16x128xf32>,
    %c0_57 = arith.constant 0 : index
    %c0_58 = arith.constant 0 : index
    %c0_59 = arith.constant 0 : index
    %53 = vector.load %arg5[%c0_57, %c0_58, %c0_59] : memref<2x18x128xf32, #tpu.memory_space<vmem>>, vector<2x16x128xf32>
    %c0_60 = arith.constant 0 : index
    %c2_61 = arith.constant 2 : index
    %c0_62 = arith.constant 0 : index
    %54 = vector.load %arg5[%c0_60, %c2_61, %c0_62] : memref<2x18x128xf32, #tpu.memory_space<vmem>>, vector<2x16x128xf32>
    %55 = tpu.concatenate %53, %51, %54 in 2 : vector<2x16x128xf32>, vector<2x16x128xf32>, vector<2x16x128xf32> -> vector<2x16x384xf32>
    %56 = arith.truncf %55 : vector<2x16x384xf32> to vector<2x16x384xbf16>
    %57 = vector.shape_cast %56 : vector<2x16x384xbf16> to vector<32x384xbf16>
    %c3 = arith.constant 3 : index
    %c0_63 = arith.constant 0 : index
    %c0_64 = arith.constant 0 : index
    %58 = vector.load %arg2[%c3, %c0_63, %c0_64] : memref<4x384x128xbf16, #tpu.memory_space<vmem>>, vector<1x384x128xbf16>
    %59 = vector.shape_cast %58 : vector<1x384x128xbf16> to vector<384x128xbf16>
    %cst_65 = arith.constant dense<0.000000e+00> : vector<32x128xf32>
    %60 = tpu.matmul %57, %59, %cst_65 {dimension_numbers = #tpu.dot_dimension_numbers<[1], [0], [0], [1], [0, 0, 1, 1], [], []>} : vector<32x384xbf16>, vector<384x128xbf16>, vector<32x128xf32> -> vector<32x128xf32>
    %c3_66 = arith.constant 3 : index
    %c0_67 = arith.constant 0 : index
    %61 = vector.load %arg3[%c3_66, %c0_67] : memref<4x128xf32, #tpu.memory_space<vmem>>, vector<1x128xf32>
    %62 = vector.broadcast %61 : vector<1x128xf32> to vector<32x128xf32>
    %63 = arith.addf %60, %62 : vector<32x128xf32>
    %cst_68 = arith.constant 0.000000e+00 : f32
    %64 = vector.broadcast %cst_68 : f32 to vector<32x128xf32>
    %65 = arith.maximumf %63, %64 : vector<32x128xf32>
    %66 = vector.shape_cast %65 : vector<32x128xf32> to vector<2x16x128xf32>
    %67 = arith.addf %66, %36 : vector<2x16x128xf32>
    %68 = arith.addf %67, %3 : vector<2x16x128xf32>
    %c0_69 = arith.constant 0 : index
    %c0_70 = arith.constant 0 : index
    %c0_71 = arith.constant 0 : index
    %69 = vector.load %arg4[%c0_69, %c0_70, %c0_71] : memref<2x16x128xf32, #tpu.memory_space<vmem>>, vector<2x16x128xf32>
    tpu.vector_store %arg4[%c0_69, %c0_70, %c0_71], %68 {strides = array<i32>} : memref<2x16x128xf32, #tpu.memory_space<vmem>>, vector<2x16x128xf32>,
    return
  }
  func.func @transform_0(%arg0: i32) -> (i32, i32, i32) {
    %c0_i32 = arith.constant 0 : i32
    %c0_i32_0 = arith.constant 0 : i32
    %c0_i32_1 = arith.constant 0 : i32
    return %arg0, %c0_i32, %c0_i32_0 : i32, i32, i32
  }
  func.func @transform_1(%arg0: i32) -> (i32, i32, i32) {
    %c0_i32 = arith.constant 0 : i32
    %c0_i32_0 = arith.constant 0 : i32
    %c0_i32_1 = arith.constant 0 : i32
    %c0_i32_2 = arith.constant 0 : i32
    return %c0_i32, %c0_i32_0, %c0_i32_1 : i32, i32, i32
  }
  func.func @transform_2(%arg0: i32) -> (i32, i32) {
    %c0_i32 = arith.constant 0 : i32
    %c0_i32_0 = arith.constant 0 : i32
    %c0_i32_1 = arith.constant 0 : i32
    return %c0_i32, %c0_i32_0 : i32, i32
  }
  func.func @transform_3(%arg0: i32) -> (i32, i32, i32) {
    %c0_i32 = arith.constant 0 : i32
    %c0_i32_0 = arith.constant 0 : i32
    %c0_i32_1 = arith.constant 0 : i32
    return %arg0, %c0_i32, %c0_i32_0 : i32, i32, i32
  }
}

</mosaic_0001>

<bundles_post_ra>
// kernel: tile.35
= control target key start
LH: loop header
LB: loop body
LE: loop exit
PB: predicated region body
PF: predicated region fallthrough
CT: control target
= control target key end

     0   :  { %s28_s0 = inlined_call_operand.vmem [shape: f32[8], index: 0, kind: input, shape index: {}]   ;;  %s29_s1 = inlined_call_operand.vmem [shape: f32[16,8], index: 1, kind: output, shape index: {}]  }
   0x1   :  { %v4_v0 = vld [vmem:[%s28_s0] ss:$0 sm:$0xff] }
   0x2   :  { %5 = vst [vmem:[%s29_s1] sm:$0xff] %v4_v0 }
   0x3   :  { %8 = vst [vmem:[%s29_s1 + $0x8] sm:$0xff] %v4_v0 }

// kernel: tile.39
= control target key start
LH: loop header
LB: loop body
LE: loop exit
PB: predicated region body
PF: predicated region fallthrough
CT: control target
= control target key end

     0   :  { %s131_s10 = smov 120   ;;  %s132_s11 = smov 104   ;;  %vm3_vm0 = vcmask 64512   ;;  %vm9_vm1 = vcmask 1048512   ;;  %vm15_vm2 = vcmask 982912   ;;  %vm21_vm3 = vcmask 917312   ;;  %s207_s0 = inlined_call_operand.vmem [shape: f32[16,8], index: 0, kind: input, shape index: {}]   ;;  %s208_s1 = inlined_call_operand.vmem [shape: f32[1,128], index: 1, kind: output, shape index: {}]  }
   0x1   :  { %v101_v0 = vld [vmem:[%s207_s0 + $0xf] sm:$0x1]   ;;  %v103_v1 = vld [vmem:[%s207_s0 + $0xd] sm:$0x1]   ;;  %v105_v2 = vld [vmem:[%s207_s0 + $0xb] sm:$0x1]  }
   0x2   :  { %7 = vrot.lane.b32.xlu0 %v101_v0, %s131_s10  ;;  %19 = vrot.lane.b32.xlu1 %v103_v1, %s132_s11  ;;  %s133_s14 = smov 88   ;;  %v102_v3 = vld [vmem:[%s207_s0 + $0xe] sm:$0x1]   ;;  %v104_v4 = vld [vmem:[%s207_s0 + $0xc] sm:$0x1]   ;;  %s134_s19 = smov 112  }
   0x3   :  { %31 = vrot.lane.b32.xlu2 %v105_v2, %s133_s14  ;;  %s135_s20 = smov 96   ;;  %v106_v5 = vld [vmem:[%s207_s0 + $0xa] sm:$0x1]   ;;  %s136_s23 = smov 80   ;;  %v107_v6 = vld [vmem:[%s207_s0 + $0x9] sm:$0x1]  }
   0x4   :  { %v108_v7 = vld [vmem:[%s207_s0 + $0x8] sm:$0x1]   ;;  %s137_s28 = smov 72   ;;  %s138_s29 = smov 64   ;;  %v109_v8 = vld [vmem:[%s207_s0 + $0x7] sm:$0x1]  }
   0x5   :  { %s139_s3 = smov 56   ;;  %v110_v9 = vld [vmem:[%s207_s0 + $0x6] sm:$0x1]   ;;  %v111_v10 = vld [vmem:[%s207_s0 + $0x5] sm:$0x1]   ;;  %s140_s8 = smov 48  }
   0x6   :  { %s141_s9 = smov 40   ;;  %v112_v11 = vld [vmem:[%s207_s0 + $0x4] sm:$0x1]   ;;  %s142_s12 = smov 32   ;;  %v113_v12 = vld [vmem:[%s207_s0 + $0x3] sm:$0x1]  }
   0x7   :  { %v114_v13 = vld [vmem:[%s207_s0 + $0x2] sm:$0x1]   ;;  %s143_s17 = smov 24   ;;  %s144_s18 = smov 16   ;;  %v115_v14 = vld [vmem:[%s207_s0 + $0x1] sm:$0x1]  }
   0x8   :  { %s145_s21 = smov 8   ;;  %v2_v15 = vld [vmem:[%s207_s0] sm:$0x1]   ;;  %vm27_vm4 = vcmask 851712   ;;  %vm33_vm5 = vcmask 786112   ;;  %vm39_vm6 = vcmask 720512  }
   0x9   :  { %4 = vst.msk [vmem:[#allocation0] sm:$0x1] %vm3_vm0, %v2_v15   ;;  %vm45_vm7 = vcmask 654912   ;;  %vm51_vm8 = vcmask 589312   ;;  %vm57_vm9 = vcmask 523712   ;;  %vm63_vm10 = vcmask 458112  }
   0xa   :  { %13 = vrot.lane.b32.xlu0 %v102_v3, %s134_s19  ;;  %25 = vrot.lane.b32.xlu1 %v104_v4, %s135_s20  ;;  %vm69_vm11 = vcmask 392512   ;;  %vm75_vm12 = vcmask 326912   ;;  %vm81_vm13 = vcmask 261312   ;;  %vm87_vm14 = vcmask 195712  }
   0xb   :  { %37 = vrot.lane.b32.xlu2 %v106_v5, %s136_s23  ;;  %vm93_vm15 = vcmask 130112  }
  0x12   :  { %43 = vrot.lane.b32.xlu0 %v107_v6, %s137_s28  ;;  %49 = vrot.lane.b32.xlu1 %v108_v7, %s138_s29 }
  0x13   :  { %55 = vrot.lane.b32.xlu2 %v109_v8, %s139_s3 }
  0x1a   :  { %61 = vrot.lane.b32.xlu0 %v110_v9, %s140_s8  ;;  %67 = vrot.lane.b32.xlu1 %v111_v10, %s141_s9 }
  0x1b   :  { %73 = vrot.lane.b32.xlu2 %v112_v11, %s142_s12 }
  0x22   :  { %79 = vrot.lane.b32.xlu0 %v113_v12, %s143_s17  ;;  %85 = vrot.lane.b32.xlu1 %v114_v13, %s144_s18 }
  0x23   :  { %91 = vrot.lane.b32.xlu2 %v115_v14, %s145_s21 }
  0x5d   :  { %v32_v16 = vpop.permute.xlu2 %31  }
  0x65   :  { %v38_v17 = vpop.permute.xlu2 %37  }
  0x6d   :  { %v56_v18 = vpop.permute.xlu2 %55  }
  0x74   :  { %v8_v19 = vpop.permute.xlu0 %7   ;;  %v20_v20 = vpop.permute.xlu1 %19  }
  0x75   :  { %10 = vst.msk [vmem:[#allocation0] sm:$0x1] %vm9_vm1, %v8_v19   ;;  %v74_v21 = vpop.permute.xlu2 %73  }
  0x7c   :  { %v14_v22 = vpop.permute.xlu0 %13   ;;  %v26_v23 = vpop.permute.xlu1 %25  }
  0x7d   :  { %16 = vst.msk [vmem:[#allocation0] sm:$0x1] %vm15_vm2, %v14_v22   ;;  %v92_v24 = vpop.permute.xlu2 %91  }
  0x7e   :  { %22 = vst.msk [vmem:[#allocation0] sm:$0x1] %vm21_vm3, %v20_v20  }
  0x7f   :  { %28 = vst.msk [vmem:[#allocation0] sm:$0x1] %vm27_vm4, %v26_v23  }
  0x80   :  { %34 = vst.msk [vmem:[#allocation0] sm:$0x1] %vm33_vm5, %v32_v16  }
  0x81   :  { %40 = vst.msk [vmem:[#allocation0] sm:$0x1] %vm39_vm6, %v38_v17  }
  0x84   :  { %v44_v25 = vpop.permute.xlu0 %43   ;;  %v50_v26 = vpop.permute.xlu1 %49  }
  0x85   :  { %46 = vst.msk [vmem:[#allocation0] sm:$0x1] %vm45_vm7, %v44_v25  }
  0x86   :  { %52 = vst.msk [vmem:[#allocation0] sm:$0x1] %vm51_vm8, %v50_v26  }
  0x87   :  { %58 = vst.msk [vmem:[#allocation0] sm:$0x1] %vm57_vm9, %v56_v18  }
  0x8c   :  { %v62_v27 = vpop.permute.xlu0 %61   ;;  %v68_v28 = vpop.permute.xlu1 %67  }
  0x8d   :  { %64 = vst.msk [vmem:[#allocation0] sm:$0x1] %vm63_vm10, %v62_v27  }
  0x8e   :  { %70 = vst.msk [vmem:[#allocation0] sm:$0x1] %vm69_vm11, %v68_v28  }
  0x8f   :  { %76 = vst.msk [vmem:[#allocation0] sm:$0x1] %vm75_vm12, %v74_v21  }
  0x94   :  { %v80_v29 = vpop.permute.xlu0 %79   ;;  %v86_v30 = vpop.permute.xlu1 %85  }
  0x95   :  { %82 = vst.msk [vmem:[#allocation0] sm:$0x1] %vm81_vm13, %v80_v29  }
  0x96   :  { %88 = vst.msk [vmem:[#allocation0] sm:$0x1] %vm87_vm14, %v86_v30  }
  0x97   :  { %94 = vst.msk [vmem:[#allocation0] sm:$0x1] %vm93_vm15, %v92_v24  }
  0x9e   :  { %v97_v31 = vld [vmem:[#allocation0] sm:$0x1] }
  0x9f   :  { %100 = vst [vmem:[%s208_s1] sm:$0x1] %v97_v31 }

// kernel: cascade_res_block.1
= control target key start
LH: loop header
LB: loop body
LE: loop exit
PB: predicated region body
PF: predicated region fallthrough
CT: control target
= control target key end

     0   :  { %s2177_s12 = smov 0   ;;  %s2545_s0 = inlined_call_operand.vmem [shape: f32[4,16,128], index: 0, kind: input, shape index: {}]   ;;  %s2546_s1 = inlined_call_operand.vmem [shape: bf16[4,384,128], index: 1, kind: input, shape index: {}]   ;;  %s2547_s2 = inlined_call_operand.vmem [shape: f32[4,128], index: 2, kind: input, shape index: {}]   ;;  %s2548_s3 = inlined_call_operand.vmem [shape: f32[4,16,128], index: 3, kind: output, shape index: {}]  }
   0x1 LB: > { %s1496_s13 = sadd.s32 4294967295, %s2154_s12   ;;  %p1500_p0 = scmp.ge.s32.totalorder %s2154_s12, 1  ;;  %s2154_s12 = sphi %s2177_s12, %s13_s12  }
   0x2   : > { %p139_p1 = scmp.lt.s32.totalorder %s2154_s12, 3 }
   0x4   : > { %p140_p2 = pnand %p1500_p0, %p139_p1 }
   0x5   : > { %s1501_s20 = sshll.u32 (!%p140_p2), %s1496_s13, 1 }
   0x6   : > { %143 = sbr.rel (%p140_p2) target bundleno = 698 (0x2ba), region = 32  ;;  %p166_p3 = scmp.lt.s32.totalorder (!%p140_p2), %s1501_s20, 3 }
   0xb   : > { %v2046_v0 = vld [vmem:[%s2546_s1 + $0x38] sm:$0xff]  ;;  %v2156_v3 = vmov 0.0   ;;  %v2045_v4 = vld [vmem:[%s2546_s1 + $0x30] sm:$0xff]  ;;  %s2550_s20 = smov (!%p166_p3, %s1501_s20), 3  ;;  %v2044_v7 = vld [vmem:[%s2546_s1 + $0x28] sm:$0xff] }
   0xc   : > { %v2054_v1 = vld [vmem:[%s2546_s1 + $0x78] sm:$0xff]  ;;  %179 = vst [vmem:[#allocation2] sm:$0x1] %v2156_v3  ;;  %433 = vmatpush.bf16.msra.mxu0 %v2046_v0  ;;  %v2053_v5 = vld [vmem:[%s2546_s1 + $0x70] sm:$0xff]  ;;  %s2037_s27 = sshll.u32 %s2550_s20, 4  ;;  %v2052_v8 = vld [vmem:[%s2546_s1 + $0x68] sm:$0xff] }
   0xd   : > { %v2062_v2 = vld [vmem:[%s2546_s1 + $0xb8] sm:$0xff]  ;;  %452 = vmatpush.bf16.msra.mxu1 %v2054_v1  ;;  %180 = vst [vmem:[#allocation2 + $0x18] sm:$0x1] %v2156_v3  ;;  %v2061_v6 = vld [vmem:[%s2546_s1 + $0xb0] sm:$0xff]  ;;  %s170_s7 = scalar_lea.vmem %s2545_s0, %s2037_s27  ;;  %v2060_v9 = vld [vmem:[%s2546_s1 + $0xa8] sm:$0xff]  ;;  %s177_s29 = scalar_lea.vmem %s2548_s3, %s2037_s27 }
   0xe   : > { %471 = vmatpush.bf16.msra.mxu2 %v2062_v2  ;;  %181 = vst [vmem:[#allocation2 + $0x11] sm:$0x1] %v2156_v3  ;;  %v2043_v10 = vld [vmem:[%s2546_s1 + $0x20] sm:$0xff]  ;;  %v2225_v12 = vld [vmem:[%s170_s7 + $0x8] sm:$0xff]  ;;  %v2227_v13 = vld [vmem:[%s170_s7 + $0x10] sm:$0xff] }
   0xf   : > { %182 = vst [vmem:[#allocation2 + $0x29] sm:$0x1] %v2156_v3  ;;  %v2223_v11 = vld [vmem:[%s170_s7] sm:$0xff]  ;;  %v2230_v14 = vld [vmem:[%s170_s7 + $0x18] sm:$0xff]  ;;  %v2041_v20 = vld [vmem:[%s2546_s1 + $0x10] sm:$0xff] }
  0x10   : > { %434 = vmatpush.bf16.msra.mxu0 %v2045_v4  ;;  %187 = vst [vmem:[#allocation2 + $0x1] sm:$0xff] %v2223_v11  ;;  %v2051_v15 = vld [vmem:[%s2546_s1 + $0x60] sm:$0xff]  ;;  %v2042_v17 = vld [vmem:[%s2546_s1 + $0x18] sm:$0xff]  ;;  %v2049_v21 = vld [vmem:[%s2546_s1 + $0x50] sm:$0xff] }
  0x11   : > { %453 = vmatpush.bf16.msra.mxu1 %v2053_v5  ;;  %188 = vst [vmem:[#allocation2 + $0x9] sm:$0xff] %v2225_v12  ;;  %v2059_v16 = vld [vmem:[%s2546_s1 + $0xa0] sm:$0xff]  ;;  %v2050_v18 = vld [vmem:[%s2546_s1 + $0x58] sm:$0xff]  ;;  %v2057_v24 = vld [vmem:[%s2546_s1 + $0x90] sm:$0xff] }
  0x12   : > { %472 = vmatpush.bf16.msra.mxu2 %v2061_v6  ;;  %189 = vst [vmem:[#allocation2 + $0x19] sm:$0xff] %v2227_v13  ;;  %v2058_v19 = vld [vmem:[%s2546_s1 + $0x98] sm:$0xff]  ;;  %v2040_v29 = vld [vmem:[%s2546_s1 + $0x8] sm:$0xff]  ;;  %v2039_v38 = vld [vmem:[%s2546_s1] sm:$0xff] }
  0x13   : > { %190 = vst [vmem:[#allocation2 + $0x21] sm:$0xff] %v2230_v14  ;;  %v2048_v30 = vld [vmem:[%s2546_s1 + $0x48] sm:$0xff]  ;;  %v2047_v39 = vld [vmem:[%s2546_s1 + $0x40] sm:$0xff]  ;;  %v2070_v63 = vld [vmem:[%s2546_s1 + $0xf8] sm:$0xff] }
  0x14   : > { %435 = vmatpush.bf16.msra.mxu0 %v2044_v7  ;;  %v2056_v33 = vld [vmem:[%s2546_s1 + $0x88] sm:$0xff]  ;;  %v2055_v42 = vld [vmem:[%s2546_s1 + $0x80] sm:$0xff]  ;;  %v2078_v0 = vld [vmem:[%s2546_s1 + $0x138] sm:$0xff]  ;;  %741 = vmatpush.bf16.msra.mxu3 %v2070_v63 }
  0x15   : > { %454 = vmatpush.bf16.msra.mxu1 %v2052_v8  ;;  %v2086_v1 = vld [vmem:[%s2546_s1 + $0x178] sm:$0xff]  ;;  %v2069_v2 = vld [vmem:[%s2546_s1 + $0xf0] sm:$0xff]  ;;  %v2068_v5 = vld [vmem:[%s2546_s1 + $0xe8] sm:$0xff] }
  0x16   : > { %473 = vmatpush.bf16.msra.mxu2 %v2060_v9  ;;  %v2077_v3 = vld [vmem:[%s2546_s1 + $0x130] sm:$0xff]  ;;  %v2076_v6 = vld [vmem:[%s2546_s1 + $0x128] sm:$0xff]  ;;  %v2067_v8 = vld [vmem:[%s2546_s1 + $0xe0] sm:$0xff] }
  0x17   : > { %v191_v22 = vld [vmem:[#allocation2] sm:$0xff]  ;;  %v2085_v4 = vld [vmem:[%s2546_s1 + $0x170] sm:$0xff]  ;;  %v2084_v7 = vld [vmem:[%s2546_s1 + $0x168] sm:$0xff] }
  0x18   : > { %436 = vmatpush.bf16.msra.mxu0 %v2043_v10  ;;  %v192_v23 = vld [vmem:[#allocation2 + $0x8] sm:$0xff]  ;;  %v199_v27 = vpack.c.bf16 %v2223_v11, %v191_v22  ;;  %742 = vmatpush.bf16.msra.mxu3 %v2069_v2  ;;  %v2075_v9 = vld [vmem:[%s2546_s1 + $0x120] sm:$0xff] }
  0x19   : > { %455 = vmatpush.bf16.msra.mxu1 %v2051_v15  ;;  %v195_v25 = vld [vmem:[#allocation2 + $0x2] sm:$0xff]  ;;  %v196_v26 = vld [vmem:[#allocation2 + $0xa] sm:$0xff]  ;;  %v201_v28 = vpack.c.bf16 %v2225_v12, %v192_v23  ;;  %v193_v46 = vld [vmem:[#allocation2 + $0x18] sm:$0xff] }
  0x1a   : > { %474 = vmatpush.bf16.msra.mxu2 %v2059_v16  ;;  %v200_v31 = vpack.c.bf16 %v195_v25, %v195_v25  ;;  %v202_v32 = vpack.c.bf16 %v196_v26, %v196_v26  ;;  %v265_v34 = vunpack.c.l.b16 %v199_v27  ;;  %v266_v36 = vunpack.c.h.b16 %v199_v27  ;;  %v194_v47 = vld [vmem:[#allocation2 + $0x20] sm:$0xff]  ;;  %v2066_v15 = vld [vmem:[%s2546_s1 + $0xd8] sm:$0xff]  ;;  %v2072_v22 = vld [vmem:[%s2546_s1 + $0x108] sm:$0xff] }
  0x1b   : > { %v268_v35 = vunpack.c.l.b16 %v201_v28  ;;  %v269_v37 = vunpack.c.h.b16 %v201_v28  ;;  %v197_v48 = vld [vmem:[#allocation2 + $0x1a] sm:$0xff]  ;;  %v198_v49 = vld [vmem:[#allocation2 + $0x22] sm:$0xff]  ;;  %v203_v50 = vpack.c.bf16 %v2227_v13, %v193_v46  ;;  %v205_v51 = vpack.c.bf16 %v2230_v14, %v194_v47 }
  0x1c   : > { %437 = vmatpush.bf16.msra.mxu0 %v2042_v17  ;;  %v267_v40 = vunpack.c.l.b16 %v200_v31  ;;  %v270_v41 = vunpack.c.l.b16 %v202_v32  ;;  %v204_v52 = vpack.c.bf16 %v197_v48, %v197_v48  ;;  %v206_v53 = vpack.c.bf16 %v198_v49, %v198_v49  ;;  %743 = vmatpush.bf16.msra.mxu3 %v2068_v5  ;;  %v2083_v10 = vld [vmem:[%s2546_s1 + $0x160] sm:$0xff]  ;;  %v2074_v16 = vld [vmem:[%s2546_s1 + $0x118] sm:$0xff]  ;;  %v2080_v23 = vld [vmem:[%s2546_s1 + $0x148] sm:$0xff] }
  0x1d   : > { %456 = vmatpush.bf16.msra.mxu1 %v2050_v18  ;;  %v277_v43 = vpack.c.b16 %v268_v35, %v265_v34  ;;  %v278_v44 = vpack.c.b16 %v269_v37, %v266_v36  ;;  %v271_v54 = vunpack.c.l.b16 %v203_v50  ;;  %v274_v55 = vunpack.c.l.b16 %v205_v51  ;;  %v2082_v17 = vld [vmem:[%s2546_s1 + $0x158] sm:$0xff]  ;;  %v2065_v18 = vld [vmem:[%s2546_s1 + $0xd0] sm:$0xff]  ;;  %v2063_v25 = vld [vmem:[%s2546_s1 + $0xc0] sm:$0xff] }
  0x1e   : > { %475 = vmatpush.bf16.msra.mxu2 %v2058_v19  ;;  %v279_v45 = vpack.c.b16 %v270_v41, %v267_v40  ;;  %v272_v56 = vunpack.c.h.b16 %v203_v50  ;;  %v275_v57 = vunpack.c.h.b16 %v205_v51  ;;  %v273_v58 = vunpack.c.l.b16 %v204_v52  ;;  %v2073_v19 = vld [vmem:[%s2546_s1 + $0x110] sm:$0xff]  ;;  %v2071_v26 = vld [vmem:[%s2546_s1 + $0x100] sm:$0xff] }
  0x1f   : > { %v276_v59 = vunpack.c.l.b16 %v206_v53  ;;  %v280_v60 = vpack.c.b16 %v274_v55, %v271_v54  ;;  %v2079_v27 = vld [vmem:[%s2546_s1 + $0x140] sm:$0xff] }
  0x20   : > { %438 = vmatpush.bf16.msra.mxu0 %v2041_v20  ;;  %v281_v61 = vpack.c.b16 %v275_v57, %v272_v56  ;;  %744 = vmatpush.bf16.msra.mxu3 %v2067_v8  ;;  %v2081_v20 = vld [vmem:[%s2546_s1 + $0x150] sm:$0xff] }
  0x21   : > { %457 = vmatpush.bf16.msra.mxu1 %v2049_v21  ;;  %v282_v62 = vpack.c.b16 %v276_v59, %v273_v58  ;;  %v2064_v21 = vld [vmem:[%s2546_s1 + $0xc8] sm:$0xff] }
  0x22   : > { %476 = vmatpush.bf16.msra.mxu2 %v2057_v24  ;;  %v2144_v24 = vld [vmem:[%s2547_s2] ss:$0 sm:$0xff] }
  0x24   : > { %439 = vmatpush.bf16.msra.mxu0 %v2040_v29  ;;  %745 = vmatpush.bf16.msra.mxu3 %v2066_v15 }
  0x25   : > { %458 = vmatpush.bf16.msra.mxu1 %v2048_v30 }
  0x26   : > { %477 = vmatpush.bf16.msra.mxu2 %v2056_v33 }
  0x28   : > { %440 = vmatpush.bf16.msra.mxu0 %v2039_v38  ;;  %746 = vmatpush.bf16.msra.mxu3 %v2065_v18 }
  0x29   : > { %459 = vmatpush.bf16.msra.mxu1 %v2047_v39 }
  0x2a   : > { %478 = vmatpush.bf16.msra.mxu2 %v2055_v42 }
  0x2b   : > { %441 = vmatmul.bf16.vlgmr.msra.gmra.mxu0 %v277_v43 }
  0x2c   : > { %460 = vmatmul.bf16.vlgmr.msra.gmra.mxu1 %v278_v44  ;;  %760 = vmatpush.bf16.msrb.mxu0 %v2078_v0 }
  0x2d   : > { %479 = vmatmul.bf16.vlgmr.msra.gmra.mxu2 %v279_v45  ;;  %779 = vmatpush.bf16.msrb.mxu1 %v2086_v1 }
  0x2e   : > { %747 = vmatpush.bf16.msra.mxu3 %v2064_v21 }
  0x30   : > { %761 = vmatpush.bf16.msrb.mxu0 %v2077_v3 }
  0x31   : > { %780 = vmatpush.bf16.msrb.mxu1 %v2085_v4 }
  0x32   : > { %748 = vmatpush.bf16.msra.mxu3 %v2063_v25 }
  0x34   : > { %762 = vmatpush.bf16.msrb.mxu0 %v2076_v6 }
  0x35   : > { %781 = vmatpush.bf16.msrb.mxu1 %v2084_v7 }
  0x38   : > { %763 = vmatpush.bf16.msrb.mxu0 %v2075_v9 }
  0x39   : > { %782 = vmatpush.bf16.msrb.mxu1 %v2083_v10 }
  0x3b   : > { %446 = vmatmul.bf16.gmra.mxu0 %v280_v60 }
  0x3c   : > { %465 = vmatmul.bf16.gmra.mxu1 %v281_v61  ;;  %764 = vmatpush.bf16.msrb.mxu0 %v2074_v16 }
  0x3d   : > { %484 = vmatmul.bf16.gmra.mxu2 %v282_v62  ;;  %783 = vmatpush.bf16.msrb.mxu1 %v2082_v17 }
  0x40   : > { %765 = vmatpush.bf16.msrb.mxu0 %v2073_v19 }
  0x41   : > { %784 = vmatpush.bf16.msrb.mxu1 %v2081_v20 }
  0x44   : > { %766 = vmatpush.bf16.msrb.mxu0 %v2072_v22 }
  0x45   : > { %785 = vmatpush.bf16.msrb.mxu1 %v2080_v23 }
  0x48   : > { %767 = vmatpush.bf16.msrb.mxu0 %v2071_v26 }
  0x49   : > { %786 = vmatpush.bf16.msrb.mxu1 %v2079_v27 }
  0xa8   : > { %v442_v28 = vpop.f32.mrf.mxu0 }
  0xa9   : > { %v461_v29 = vpop.f32.mrf.mxu1  ;;  %v443_v30 = vadd.f32 %v2144_v24, %v442_v28 }
  0xab   : > { %v462_v31 = vadd.f32 %v461_v29, %v443_v30  ;;  %v2094_v30 = vld [vmem:[%s2546_s1 + $0x1b8] sm:$0xff] }
  0xac   : > { %1057 = vmatpush.bf16.msrb.mxu2 %v2094_v30 }
  0xb0   : > { %v480_v32 = vpop.f32.mrf.mxu2  ;;  %v444_v34 = vpop.f32.mrf.mxu0 }
  0xb1   : > { %v481_v33 = vadd.f32 %v480_v32, %v462_v31  ;;  %v463_v35 = vpop.f32.mrf.mxu1  ;;  %v445_v37 = vadd.f32 %v2144_v24, %v444_v34  ;;  %v2102_v31 = vld [vmem:[%s2546_s1 + $0x1f8] sm:$0xff]  ;;  %v2101_v34 = vld [vmem:[%s2546_s1 + $0x1f0] sm:$0xff] }
  0xb2   : > { %v2110_v32 = vld [vmem:[%s2546_s1 + $0x238] sm:$0xff]  ;;  %1076 = vmatpush.bf16.msrb.mxu3 %v2102_v31 }
  0xb3   : > { %v490_v36 = vmax.f32 %v481_v33, 0.0  ;;  %v464_v38 = vadd.f32 %v463_v35, %v445_v37  ;;  %1095 = vmatpush.bf16.msra.mxu0 %v2110_v32  ;;  %v2093_v33 = vld [vmem:[%s2546_s1 + $0x1b0] sm:$0xff]  ;;  %v2100_v37 = vld [vmem:[%s2546_s1 + $0x1e8] sm:$0xff] }
  0xb4   : > { %v2109_v35 = vld [vmem:[%s2546_s1 + $0x230] sm:$0xff]  ;;  %1058 = vmatpush.bf16.msrb.mxu2 %v2093_v33 }
  0xb5   : > { %494 = vst [vmem:[#allocation2 + $0x1] sm:$0xff] %v490_v36 }
  0xb6   : > { %1077 = vmatpush.bf16.msrb.mxu3 %v2101_v34 }
  0xb7   : > { %1096 = vmatpush.bf16.msra.mxu0 %v2109_v35 }
  0xb8   : > { %v482_v39 = vpop.f32.mrf.mxu2  ;;  %v447_v41 = vpop.f32.mrf.mxu0 }
  0xb9   : > { %v483_v40 = vadd.f32 %v482_v39, %v464_v38  ;;  %v448_v42 = vadd.f32 %v2144_v24, %v447_v41  ;;  %v466_v44 = vpop.f32.mrf.mxu1  ;;  %v2108_v38 = vld [vmem:[%s2546_s1 + $0x228] sm:$0xff]  ;;  %v2091_v39 = vld [vmem:[%s2546_s1 + $0x1a0] sm:$0xff] }
  0xba   : > { %1078 = vmatpush.bf16.msrb.mxu3 %v2100_v37  ;;  %v2107_v41 = vld [vmem:[%s2546_s1 + $0x220] sm:$0xff] }
  0xbb   : > { %v491_v43 = vmax.f32 %v483_v40, 0.0  ;;  %v467_v45 = vadd.f32 %v466_v44, %v448_v42  ;;  %1097 = vmatpush.bf16.msra.mxu0 %v2108_v38  ;;  %v2099_v40 = vld [vmem:[%s2546_s1 + $0x1e0] sm:$0xff]  ;;  %v2090_v42 = vld [vmem:[%s2546_s1 + $0x198] sm:$0xff] }
  0xbc   : > { %v498_v46 = vld [vmem:[#allocation2] sm:$0xff]  ;;  %v2106_v44 = vld [vmem:[%s2546_s1 + $0x218] sm:$0xff] }
  0xbd   : > { %495 = vst [vmem:[#allocation2 + $0x9] sm:$0xff] %v491_v43  ;;  %v506_v50 = vpack.c.bf16 %v490_v36, %v498_v46  ;;  %v2092_v36 = vld [vmem:[%s2546_s1 + $0x1a8] sm:$0xff]  ;;  %v2097_v46 = vld [vmem:[%s2546_s1 + $0x1d0] sm:$0xff] }
  0xbe   : > { %1059 = vmatpush.bf16.msrb.mxu2 %v2092_v36  ;;  %1079 = vmatpush.bf16.msrb.mxu3 %v2099_v40 }
  0xbf   : > { %v574_v60 = vunpack.c.h.b16 %v506_v50  ;;  %v573_v62 = vunpack.c.l.b16 %v506_v50  ;;  %1098 = vmatpush.bf16.msra.mxu0 %v2107_v41  ;;  %v2104_v50 = vld [vmem:[%s2546_s1 + $0x208] sm:$0xff] }
  0xc0   : > { %v485_v47 = vpop.f32.mrf.mxu2  ;;  %v449_v49 = vpop.f32.mrf.mxu0 }
  0xc1   : > { %v486_v48 = vadd.f32 %v485_v47, %v467_v45  ;;  %v450_v51 = vadd.f32 %v2144_v24, %v449_v49  ;;  %v468_v57 = vpop.f32.mrf.mxu1  ;;  %v2089_v45 = vld [vmem:[%s2546_s1 + $0x190] sm:$0xff]  ;;  %v2096_v49 = vld [vmem:[%s2546_s1 + $0x1c8] sm:$0xff] }
  0xc2   : > { %1060 = vmatpush.bf16.msrb.mxu2 %v2091_v39  ;;  %v2105_v47 = vld [vmem:[%s2546_s1 + $0x210] sm:$0xff] }
  0xc3   : > { %v492_v52 = vmax.f32 %v486_v48, 0.0  ;;  %v469_v61 = vadd.f32 %v468_v57, %v450_v51  ;;  %1099 = vmatpush.bf16.msra.mxu0 %v2106_v44  ;;  %v2088_v48 = vld [vmem:[%s2546_s1 + $0x188] sm:$0xff] }
  0xc4   : > { %v499_v53 = vld [vmem:[#allocation2 + $0x8] sm:$0xff] }
  0xc5   : > { %v502_v54 = vld [vmem:[#allocation2 + $0x2] sm:$0xff]  ;;  %v503_v55 = vld [vmem:[#allocation2 + $0xa] sm:$0xff]  ;;  %v508_v56 = vpack.c.bf16 %v491_v43, %v499_v53  ;;  %496 = vst [vmem:[#allocation2 + $0x19] sm:$0xff] %v492_v52  ;;  %v2098_v43 = vld [vmem:[%s2546_s1 + $0x1d8] sm:$0xff] }
  0xc6   : > { %v507_v58 = vpack.c.bf16 %v502_v54, %v502_v54  ;;  %v509_v59 = vpack.c.bf16 %v503_v55, %v503_v55  ;;  %1061 = vmatpush.bf16.msrb.mxu2 %v2090_v42  ;;  %1080 = vmatpush.bf16.msrb.mxu3 %v2098_v43  ;;  %v2087_v54 = vld [vmem:[%s2546_s1 + $0x180] sm:$0xff] }
  0xc7   : > { %v577_v63 = vunpack.c.h.b16 %v508_v56  ;;  %v576_v0 = vunpack.c.l.b16 %v508_v56  ;;  %1100 = vmatpush.bf16.msra.mxu0 %v2105_v47  ;;  %v2095_v55 = vld [vmem:[%s2546_s1 + $0x1c0] sm:$0xff] }
  0xc8   : > { %v575_v1 = vunpack.c.l.b16 %v507_v58  ;;  %v578_v2 = vunpack.c.l.b16 %v509_v59  ;;  %v487_v3 = vpop.f32.mrf.mxu2  ;;  %v2103_v56 = vld [vmem:[%s2546_s1 + $0x200] sm:$0xff] }
  0xc9   : > { %v488_v4 = vadd.f32 %v487_v3, %v469_v61  ;;  %v585_v5 = vpack.c.b16 %v576_v0, %v573_v62  ;;  %v586_v6 = vpack.c.b16 %v577_v63, %v574_v60 }
  0xca   : > { %v587_v7 = vpack.c.b16 %v578_v2, %v575_v1  ;;  %1062 = vmatpush.bf16.msrb.mxu2 %v2089_v45  ;;  %1081 = vmatpush.bf16.msrb.mxu3 %v2097_v46 }
  0xcb   : > { %v493_v8 = vmax.f32 %v488_v4, 0.0  ;;  %749 = vmatmul.bf16.vlgmr.msra.gmra.mxu3 %v585_v5  ;;  %768 = vmatmul.bf16.vlgmr.msrb.gmra.mxu0 %v586_v6 }
  0xcc   : > { %787 = vmatmul.bf16.vlgmr.msrb.gmra.mxu1 %v587_v7  ;;  %v500_v9 = vld [vmem:[#allocation2 + $0x18] sm:$0xff]  ;;  %1101 = vmatpush.bf16.msra.mxu0 %v2104_v50 }
  0xcd   : > { %497 = vst [vmem:[#allocation2 + $0x21] sm:$0xff] %v493_v8  ;;  %v510_v10 = vpack.c.bf16 %v492_v52, %v500_v9  ;;  %v2145_v52 = vld [vmem:[%s2547_s2 + $0x1] ss:$0 sm:$0xff] }
  0xce   : > { %1063 = vmatpush.bf16.msrb.mxu2 %v2088_v48  ;;  %1082 = vmatpush.bf16.msrb.mxu3 %v2096_v49 }
  0xcf   : > { %v579_v21 = vunpack.c.l.b16 %v510_v10  ;;  %v580_v22 = vunpack.c.h.b16 %v510_v10 }
  0xd0   : > { %1102 = vmatpush.bf16.msra.mxu0 %v2103_v56 }
  0xd2   : > { %1064 = vmatpush.bf16.msrb.mxu2 %v2087_v54  ;;  %1083 = vmatpush.bf16.msrb.mxu3 %v2095_v55 }
  0xd4   : > { %v501_v15 = vld [vmem:[#allocation2 + $0x20] sm:$0xff] }
  0xd5   : > { %v504_v16 = vld [vmem:[#allocation2 + $0x1a] sm:$0xff]  ;;  %v505_v17 = vld [vmem:[#allocation2 + $0x22] sm:$0xff]  ;;  %v512_v18 = vpack.c.bf16 %v493_v8, %v501_v15 }
  0xd6   : > { %v511_v19 = vpack.c.bf16 %v504_v16, %v504_v16  ;;  %v513_v20 = vpack.c.bf16 %v505_v17, %v505_v17 }
  0xd7   : > { %v582_v23 = vunpack.c.l.b16 %v512_v18  ;;  %v583_v24 = vunpack.c.h.b16 %v512_v18 }
  0xd8   : > { %v581_v25 = vunpack.c.l.b16 %v511_v19  ;;  %v584_v26 = vunpack.c.l.b16 %v513_v20 }
  0xd9   : > { %v588_v27 = vpack.c.b16 %v582_v23, %v579_v21  ;;  %v589_v28 = vpack.c.b16 %v583_v24, %v580_v22 }
  0xda   : > { %v590_v29 = vpack.c.b16 %v584_v26, %v581_v25 }
  0xdb   : > { %754 = vmatmul.bf16.gmra.mxu3 %v588_v27  ;;  %773 = vmatmul.bf16.gmra.mxu0 %v589_v28 }
  0xdc   : > { %792 = vmatmul.bf16.gmra.mxu1 %v590_v29 }
 0x148   : > { %v769_v51 = vpop.f32.mrf.mxu0 }
 0x149   : > { %v788_v53 = vpop.f32.mrf.mxu1 }
 0x14e   : > { %v750_v57 = vpop.f32.mrf.mxu3 }
 0x14f   : > { %v751_v58 = vadd.f32 %v2145_v52, %v750_v57 }
 0x150   : > { %v771_v61 = vpop.f32.mrf.mxu0 }
 0x151   : > { %v770_v59 = vadd.f32 %v769_v51, %v751_v58  ;;  %v790_v63 = vpop.f32.mrf.mxu1 }
 0x153   : > { %v789_v60 = vadd.f32 %v788_v53, %v770_v59 }
 0x155   : > { %v798_v62 = vmax.f32 %v789_v60, 0.0 }
 0x156   : > { %v752_v0 = vpop.f32.mrf.mxu3 }
 0x157   : > { %v802_v1 = vadd.f32 %v798_v62, %v2223_v11  ;;  %v753_v2 = vadd.f32 %v2145_v52, %v752_v0 }
 0x158   : > { %v774_v7 = vpop.f32.mrf.mxu0 }
 0x159   : > { %v2432_v3 = vmax.f32 %v802_v1, 0.0  ;;  %v772_v4 = vadd.f32 %v771_v61, %v753_v2  ;;  %v793_v15 = vpop.f32.mrf.mxu1  ;;  %v2126_v1 = vld [vmem:[%s2546_s1 + $0x2b8] sm:$0xff] }
 0x15a   : > { %1384 = vmatpush.bf16.msra.mxu2 %v2126_v1  ;;  %v2118_v2 = vld [vmem:[%s2546_s1 + $0x278] sm:$0xff] }
 0x15b   : > { %810 = vst [vmem:[#allocation2 + $0x1] sm:$0xff] %v2432_v3  ;;  %v791_v5 = vadd.f32 %v790_v63, %v772_v4  ;;  %v2134_v4 = vld [vmem:[%s2546_s1 + $0x2f8] sm:$0xff]  ;;  %1365 = vmatpush.bf16.msra.mxu1 %v2118_v2 }
 0x15c   : > { %1403 = vmatpush.bf16.msra.mxu3 %v2134_v4 }
 0x15d   : > { %v799_v6 = vmax.f32 %v791_v5, 0.0  ;;  %v2125_v5 = vld [vmem:[%s2546_s1 + $0x2b0] sm:$0xff] }
 0x15e   : > { %v755_v8 = vpop.f32.mrf.mxu3  ;;  %1385 = vmatpush.bf16.msra.mxu2 %v2125_v5 }
 0x15f   : > { %v803_v9 = vadd.f32 %v799_v6, %v2225_v12  ;;  %v756_v10 = vadd.f32 %v2145_v52, %v755_v8  ;;  %v2117_v6 = vld [vmem:[%s2546_s1 + $0x270] sm:$0xff]  ;;  %v2124_v8 = vld [vmem:[%s2546_s1 + $0x2a8] sm:$0xff] }
 0x160   : > { %v776_v24 = vpop.f32.mrf.mxu0  ;;  %1366 = vmatpush.bf16.msra.mxu1 %v2117_v6 }
 0x161   : > { %v2436_v16 = vmax.f32 %v803_v9, 0.0  ;;  %v775_v17 = vadd.f32 %v774_v7, %v756_v10  ;;  %v795_v28 = vpop.f32.mrf.mxu1  ;;  %v2133_v7 = vld [vmem:[%s2546_s1 + $0x2f0] sm:$0xff]  ;;  %v2116_v9 = vld [vmem:[%s2546_s1 + $0x268] sm:$0xff] }
 0x162   : > { %v814_v20 = vld [vmem:[#allocation2] sm:$0xff]  ;;  %1404 = vmatpush.bf16.msra.mxu3 %v2133_v7  ;;  %v2132_v10 = vld [vmem:[%s2546_s1 + $0x2e8] sm:$0xff]  ;;  %1386 = vmatpush.bf16.msra.mxu2 %v2124_v8 }
 0x163   : > { %811 = vst [vmem:[#allocation2 + $0x9] sm:$0xff] %v2436_v16  ;;  %v794_v18 = vadd.f32 %v793_v15, %v775_v17  ;;  %v822_v25 = vpack.c.bf16 %v2432_v3, %v814_v20  ;;  %v2123_v15 = vld [vmem:[%s2546_s1 + $0x2a0] sm:$0xff]  ;;  %v2114_v20 = vld [vmem:[%s2546_s1 + $0x258] sm:$0xff] }
 0x164   : > { %1367 = vmatpush.bf16.msra.mxu1 %v2116_v9  ;;  %v2115_v17 = vld [vmem:[%s2546_s1 + $0x260] sm:$0xff] }
 0x165   : > { %v800_v19 = vmax.f32 %v794_v18, 0.0  ;;  %v889_v36 = vunpack.c.l.b16 %v822_v25  ;;  %v890_v37 = vunpack.c.h.b16 %v822_v25  ;;  %v2131_v18 = vld [vmem:[%s2546_s1 + $0x2e0] sm:$0xff]  ;;  %v2120_v25 = vld [vmem:[%s2546_s1 + $0x288] sm:$0xff] }
 0x166   : > { %v757_v21 = vpop.f32.mrf.mxu3  ;;  %1405 = vmatpush.bf16.msra.mxu3 %v2132_v10  ;;  %1387 = vmatpush.bf16.msra.mxu2 %v2123_v15 }
 0x167   : > { %v804_v22 = vadd.f32 %v800_v19, %v2227_v13  ;;  %v758_v23 = vadd.f32 %v2145_v52, %v757_v21  ;;  %v2122_v19 = vld [vmem:[%s2546_s1 + $0x298] sm:$0xff] }
 0x168   : > { %1368 = vmatpush.bf16.msra.mxu1 %v2115_v17  ;;  %v2130_v21 = vld [vmem:[%s2546_s1 + $0x2d8] sm:$0xff] }
 0x169   : > { %v2441_v26 = vmax.f32 %v804_v22, 0.0  ;;  %v777_v27 = vadd.f32 %v776_v24, %v758_v23  ;;  %v2121_v22 = vld [vmem:[%s2546_s1 + $0x290] sm:$0xff] }
 0x16a   : > { %v815_v29 = vld [vmem:[#allocation2 + $0x8] sm:$0xff]  ;;  %1406 = vmatpush.bf16.msra.mxu3 %v2131_v18  ;;  %1388 = vmatpush.bf16.msra.mxu2 %v2122_v19  ;;  %v2113_v23 = vld [vmem:[%s2546_s1 + $0x250] sm:$0xff] }
 0x16b   : > { %v818_v30 = vld [vmem:[#allocation2 + $0x2] sm:$0xff]  ;;  %v819_v31 = vld [vmem:[#allocation2 + $0xa] sm:$0xff]  ;;  %812 = vst [vmem:[#allocation2 + $0x19] sm:$0xff] %v2441_v26  ;;  %v796_v32 = vadd.f32 %v795_v28, %v777_v27  ;;  %v824_v33 = vpack.c.bf16 %v2436_v16, %v815_v29 }
 0x16c   : > { %v823_v34 = vpack.c.bf16 %v818_v30, %v818_v30  ;;  %v825_v35 = vpack.c.bf16 %v819_v31, %v819_v31  ;;  %1369 = vmatpush.bf16.msra.mxu1 %v2114_v20  ;;  %v2129_v24 = vld [vmem:[%s2546_s1 + $0x2d0] sm:$0xff]  ;;  %v2112_v27 = vld [vmem:[%s2546_s1 + $0x248] sm:$0xff]  ;;  %v2119_v29 = vld [vmem:[%s2546_s1 + $0x280] sm:$0xff] }
 0x16d   : > { %v801_v38 = vmax.f32 %v796_v32, 0.0  ;;  %v892_v39 = vunpack.c.l.b16 %v824_v33  ;;  %v893_v40 = vunpack.c.h.b16 %v824_v33  ;;  %v2128_v28 = vld [vmem:[%s2546_s1 + $0x2c8] sm:$0xff]  ;;  %v2111_v30 = vld [vmem:[%s2546_s1 + $0x240] sm:$0xff] }
 0x16e   : > { %v891_v41 = vunpack.c.l.b16 %v823_v34  ;;  %v894_v42 = vunpack.c.l.b16 %v825_v35  ;;  %1407 = vmatpush.bf16.msra.mxu3 %v2130_v21  ;;  %1389 = vmatpush.bf16.msra.mxu2 %v2121_v22  ;;  %v2127_v31 = vld [vmem:[%s2546_s1 + $0x2c0] sm:$0xff] }
 0x16f   : > { %v805_v43 = vadd.f32 %v801_v38, %v2230_v14  ;;  %v901_v44 = vpack.c.b16 %v892_v39, %v889_v36  ;;  %v902_v45 = vpack.c.b16 %v893_v40, %v890_v37  ;;  %v2146_v33 = vld [vmem:[%s2547_s2 + $0x2] ss:$0 sm:$0xff] }
 0x170   : > { %v903_v46 = vpack.c.b16 %v894_v42, %v891_v41  ;;  %1370 = vmatpush.bf16.msra.mxu1 %v2113_v23 }
 0x171   : > { %v2446_v47 = vmax.f32 %v805_v43, 0.0  ;;  %1065 = vmatmul.bf16.vlgmr.msrb.gmra.mxu2 %v901_v44  ;;  %1084 = vmatmul.bf16.vlgmr.msrb.gmra.mxu3 %v902_v45 }
 0x172   : > { %1103 = vmatmul.bf16.vlgmr.msra.gmra.mxu0 %v903_v46  ;;  %v816_v48 = vld [vmem:[#allocation2 + $0x18] sm:$0xff]  ;;  %1408 = vmatpush.bf16.msra.mxu3 %v2129_v24 }
 0x173   : > { %813 = vst [vmem:[#allocation2 + $0x21] sm:$0xff] %v2446_v47  ;;  %v826_v49 = vpack.c.bf16 %v2441_v26, %v816_v48  ;;  %1390 = vmatpush.bf16.msra.mxu2 %v2120_v25 }
 0x174   : > { %1371 = vmatpush.bf16.msra.mxu1 %v2112_v27 }
 0x175   : > { %v895_v56 = vunpack.c.l.b16 %v826_v49  ;;  %v896_v57 = vunpack.c.h.b16 %v826_v49 }
 0x176   : > { %1409 = vmatpush.bf16.msra.mxu3 %v2128_v28 }
 0x177   : > { %1391 = vmatpush.bf16.msra.mxu2 %v2119_v29 }
 0x178   : > { %1372 = vmatpush.bf16.msra.mxu1 %v2111_v30 }
 0x17a   : > { %v817_v50 = vld [vmem:[#allocation2 + $0x20] sm:$0xff]  ;;  %1410 = vmatpush.bf16.msra.mxu3 %v2127_v31 }
 0x17b   : > { %v820_v51 = vld [vmem:[#allocation2 + $0x1a] sm:$0xff]  ;;  %v821_v52 = vld [vmem:[#allocation2 + $0x22] sm:$0xff]  ;;  %v828_v53 = vpack.c.bf16 %v2446_v47, %v817_v50 }
 0x17c   : > { %v827_v54 = vpack.c.bf16 %v820_v51, %v820_v51  ;;  %v829_v55 = vpack.c.bf16 %v821_v52, %v821_v52 }
 0x17d   : > { %v898_v58 = vunpack.c.l.b16 %v828_v53  ;;  %v899_v59 = vunpack.c.h.b16 %v828_v53 }
 0x17e   : > { %v897_v60 = vunpack.c.l.b16 %v827_v54  ;;  %v900_v61 = vunpack.c.l.b16 %v829_v55 }
 0x17f   : > { %v904_v62 = vpack.c.b16 %v898_v58, %v895_v56  ;;  %v905_v63 = vpack.c.b16 %v899_v59, %v896_v57 }
 0x180   : > { %v906_v0 = vpack.c.b16 %v900_v61, %v897_v60 }
 0x181   : > { %1070 = vmatmul.bf16.gmra.mxu2 %v904_v62  ;;  %1089 = vmatmul.bf16.gmra.mxu3 %v905_v63 }
 0x182   : > { %1108 = vmatmul.bf16.gmra.mxu0 %v906_v0 }
 0x1ef   : > { %v1104_v32 = vpop.f32.mrf.mxu0 }
 0x1f4   : > { %v1066_v34 = vpop.f32.mrf.mxu2  ;;  %v1085_v35 = vpop.f32.mrf.mxu3 }
 0x1f5   : > { %v1067_v36 = vadd.f32 %v2146_v33, %v1066_v34 }
 0x1f7   : > { %v1086_v37 = vadd.f32 %v1085_v35, %v1067_v36  ;;  %v1106_v40 = vpop.f32.mrf.mxu0 }
 0x1f9   : > { %v1105_v38 = vadd.f32 %v1104_v32, %v1086_v37 }
 0x1fb   : > { %v1114_v39 = vmax.f32 %v1105_v38, 0.0 }
 0x1fc   : > { %v1068_v41 = vpop.f32.mrf.mxu2  ;;  %v1087_v42 = vpop.f32.mrf.mxu3 }
 0x1fd   : > { %1118 = vst [vmem:[#allocation2 + $0x1] sm:$0xff] %v1114_v39  ;;  %v1069_v43 = vadd.f32 %v2146_v33, %v1068_v41 }
 0x1ff   : > { %v1088_v44 = vadd.f32 %v1087_v42, %v1069_v43  ;;  %v1109_v51 = vpop.f32.mrf.mxu0 }
 0x201   : > { %v1107_v45 = vadd.f32 %v1106_v40, %v1088_v44  ;;  %v2147_v40 = vld [vmem:[%s2547_s2 + $0x3] ss:$0 sm:$0xff] }
 0x203   : > { %v1115_v46 = vmax.f32 %v1107_v45, 0.0 }
 0x204   : > { %v1071_v48 = vpop.f32.mrf.mxu2  ;;  %v1090_v49 = vpop.f32.mrf.mxu3  ;;  %v1122_v52 = vld [vmem:[#allocation2] sm:$0xff] }
 0x205   : > { %1119 = vst [vmem:[#allocation2 + $0x9] sm:$0xff] %v1115_v46  ;;  %v1072_v50 = vadd.f32 %v2146_v33, %v1071_v48  ;;  %v1130_v55 = vpack.c.bf16 %v1114_v39, %v1122_v52 }
 0x207   : > { %v1091_v53 = vadd.f32 %v1090_v49, %v1072_v50  ;;  %v1197_v1 = vunpack.c.l.b16 %v1130_v55  ;;  %v1198_v2 = vunpack.c.h.b16 %v1130_v55  ;;  %v1111_v9 = vpop.f32.mrf.mxu0 }
 0x209   : > { %v1110_v54 = vadd.f32 %v1109_v51, %v1091_v53 }
 0x20b   : > { %v1116_v56 = vmax.f32 %v1110_v54, 0.0 }
 0x20c   : > { %v1123_v57 = vld [vmem:[#allocation2 + $0x8] sm:$0xff]  ;;  %v1073_v58 = vpop.f32.mrf.mxu2  ;;  %v1092_v4 = vpop.f32.mrf.mxu3 }
 0x20d   : > { %v1126_v59 = vld [vmem:[#allocation2 + $0x2] sm:$0xff]  ;;  %v1127_v60 = vld [vmem:[#allocation2 + $0xa] sm:$0xff]  ;;  %v1132_v61 = vpack.c.bf16 %v1115_v46, %v1123_v57  ;;  %1120 = vst [vmem:[#allocation2 + $0x19] sm:$0xff] %v1116_v56  ;;  %v1074_v62 = vadd.f32 %v2146_v33, %v1073_v58 }
 0x20e   : > { %v1131_v63 = vpack.c.bf16 %v1126_v59, %v1126_v59  ;;  %v1133_v0 = vpack.c.bf16 %v1127_v60, %v1127_v60 }
 0x20f   : > { %v1200_v5 = vunpack.c.l.b16 %v1132_v61  ;;  %v1201_v6 = vunpack.c.h.b16 %v1132_v61  ;;  %v1093_v7 = vadd.f32 %v1092_v4, %v1074_v62 }
 0x210   : > { %v1199_v8 = vunpack.c.l.b16 %v1131_v63  ;;  %v1202_v10 = vunpack.c.l.b16 %v1133_v0 }
 0x211   : > { %v1112_v15 = vadd.f32 %v1111_v9, %v1093_v7  ;;  %v1209_v17 = vpack.c.b16 %v1200_v5, %v1197_v1  ;;  %v1210_v18 = vpack.c.b16 %v1201_v6, %v1198_v2 }
 0x212   : > { %v1211_v19 = vpack.c.b16 %v1202_v10, %v1199_v8 }
 0x213   : > { %v1117_v20 = vmax.f32 %v1112_v15, 0.0  ;;  %1373 = vmatmul.bf16.vlgmr.msra.gmra.mxu1 %v1209_v17  ;;  %1392 = vmatmul.bf16.vlgmr.msra.gmra.mxu2 %v1210_v18 }
 0x214   : > { %1411 = vmatmul.bf16.vlgmr.msra.gmra.mxu3 %v1211_v19  ;;  %v1124_v21 = vld [vmem:[#allocation2 + $0x18] sm:$0xff] }
 0x215   : > { %1121 = vst [vmem:[#allocation2 + $0x21] sm:$0xff] %v1117_v20  ;;  %v1134_v22 = vpack.c.bf16 %v1116_v56, %v1124_v21 }
 0x217   : > { %v1203_v30 = vunpack.c.l.b16 %v1134_v22  ;;  %v1204_v31 = vunpack.c.h.b16 %v1134_v22 }
 0x21c   : > { %v1125_v23 = vld [vmem:[#allocation2 + $0x20] sm:$0xff] }
 0x21d   : > { %v1128_v24 = vld [vmem:[#allocation2 + $0x1a] sm:$0xff]  ;;  %v1129_v25 = vld [vmem:[#allocation2 + $0x22] sm:$0xff]  ;;  %v1136_v27 = vpack.c.bf16 %v1117_v20, %v1125_v23 }
 0x21e   : > { %v1135_v28 = vpack.c.bf16 %v1128_v24, %v1128_v24  ;;  %v1137_v29 = vpack.c.bf16 %v1129_v25, %v1129_v25 }
 0x21f   : > { %v1206_v32 = vunpack.c.l.b16 %v1136_v27  ;;  %v1207_v33 = vunpack.c.h.b16 %v1136_v27 }
 0x220   : > { %v1205_v34 = vunpack.c.l.b16 %v1135_v28  ;;  %v1208_v35 = vunpack.c.l.b16 %v1137_v29 }
 0x221   : > { %v1212_v36 = vpack.c.b16 %v1206_v32, %v1203_v30  ;;  %v1213_v37 = vpack.c.b16 %v1207_v33, %v1204_v31 }
 0x222   : > { %v1214_v38 = vpack.c.b16 %v1208_v35, %v1205_v34 }
 0x223   : > { %1378 = vmatmul.bf16.gmra.mxu1 %v1212_v36  ;;  %1397 = vmatmul.bf16.gmra.mxu2 %v1213_v37 }
 0x224   : > { %1416 = vmatmul.bf16.gmra.mxu3 %v1214_v38 }
 0x290   : > { %v1374_v39 = vpop.f32.mrf.mxu1 }
 0x291   : > { %v1375_v41 = vadd.f32 %v2147_v40, %v1374_v39 }
 0x296   : > { %v1393_v42 = vpop.f32.mrf.mxu2 }
 0x297   : > { %v1394_v43 = vadd.f32 %v1393_v42, %v1375_v41  ;;  %v1412_v44 = vpop.f32.mrf.mxu3 }
 0x298   : > { %v1376_v45 = vpop.f32.mrf.mxu1 }
 0x299   : > { %v1413_v46 = vadd.f32 %v1412_v44, %v1394_v43  ;;  %v1377_v50 = vadd.f32 %v2147_v40, %v1376_v45 }
 0x29b   : > { %v1422_v48 = vmax.f32 %v1413_v46, 0.0 }
 0x29d   : > { %v1426_v49 = vadd.f32 %v1422_v48, %v2432_v3 }
 0x29e   : > { %v1395_v51 = vpop.f32.mrf.mxu2 }
 0x29f   : > { %v1430_v52 = vadd.f32 %v1426_v49, %v2223_v11  ;;  %v1396_v53 = vadd.f32 %v1395_v51, %v1377_v50  ;;  %v1414_v54 = vpop.f32.mrf.mxu3 }
 0x2a0   : > { %v1379_v55 = vpop.f32.mrf.mxu1 }
 0x2a1   : > { %1434 = vst [vmem:[%s177_s29] sm:$0xff] %v1430_v52  ;;  %v1415_v56 = vadd.f32 %v1414_v54, %v1396_v53  ;;  %v1380_v59 = vadd.f32 %v2147_v40, %v1379_v55 }
 0x2a3   : > { %v1423_v57 = vmax.f32 %v1415_v56, 0.0 }
 0x2a5   : > { %v1427_v58 = vadd.f32 %v1423_v57, %v2436_v16 }
 0x2a6   : > { %v1398_v60 = vpop.f32.mrf.mxu2 }
 0x2a7   : > { %v1431_v3 = vadd.f32 %v1427_v58, %v2225_v12  ;;  %v1399_v61 = vadd.f32 %v1398_v60, %v1380_v59  ;;  %v1417_v62 = vpop.f32.mrf.mxu3 }
 0x2a8   : > { %v1381_v0 = vpop.f32.mrf.mxu1 }
 0x2a9   : > { %1435 = vst [vmem:[%s177_s29 + $0x8] sm:$0xff] %v1431_v3  ;;  %v1418_v63 = vadd.f32 %v1417_v62, %v1399_v61  ;;  %v1382_v2 = vadd.f32 %v2147_v40, %v1381_v0 }
 0x2ab   : > { %v1424_v1 = vmax.f32 %v1418_v63, 0.0 }
 0x2ad   : > { %v1428_v11 = vadd.f32 %v1424_v1, %v2441_v26 }
 0x2ae   : > { %v1400_v4 = vpop.f32.mrf.mxu2 }
 0x2af   : > { %v1432_v5 = vadd.f32 %v1428_v11, %v2227_v13  ;;  %v1401_v6 = vadd.f32 %v1400_v4, %v1382_v2  ;;  %v1419_v7 = vpop.f32.mrf.mxu3 }
 0x2b1   : > { %1436 = vst [vmem:[%s177_s29 + $0x10] sm:$0xff] %v1432_v5  ;;  %v1420_v16 = vadd.f32 %v1419_v7, %v1401_v6 }
 0x2b3   : > { %v1425_v8 = vmax.f32 %v1420_v16, 0.0 }
 0x2b5   : > { %v1429_v9 = vadd.f32 %v1425_v8, %v2446_v47 }
 0x2b7   : > { %v1433_v12 = vadd.f32 %v1429_v9, %v2230_v14 }
 0x2b9   : > { %1437 = vst [vmem:[%s177_s29 + $0x18] sm:$0xff] %v1433_v12 }
 0x2ba PF: > { %s13_s12 = sadd.s32 1, %s2154_s12  }
 0x2bb   : > { %p10_p4 = scmp.ge.s32.totalorder %s13_s12, 4  }
 0x2bd   :  { %12 = sbr.rel (!%p10_p4) target bundleno = 1 (0x1), region = 65 }

</bundles_post_ra>
